<compile_context>
chip_gen: v7x
topology: tpu7x:2x2x1
jax: 0.10.0
libtpu: 0.0.40
codegen_flags: <defaults>
</compile_context>

<pallas_src>
import jax
import jax.numpy as jnp
from jax.experimental import pallas as pl
from jax.experimental.pallas import tpu as pltpu


def _round_up(x: int, mult: int) -> int:
    return ((x + mult - 1) // mult) * mult


def rpn_kernel(x_ref, w1_ref, w2_ref, o_ref):
    """One (batch-tile, n-tile) block of the fused RPN forward.

    x_ref  : (TB, m)  bf16 input tile (m is full-extent, no HBM padding)
    w1_ref : (m, TN)  bf16 (psi[:, :m] + pi)^T tile
    w2_ref : (m, TN)  bf16 psi[:, m:]^T tile
    o_ref  : (TB, TN) f32 output tile
    """
    x = x_ref[...]                                                   # (TB, m) bf16

    # x @ W1 — covers both the linear part of kappa and the remainder pi (folded).
    acc = jnp.dot(x, w1_ref[...], preferred_element_type=jnp.float32)

    # (x*x) @ W2 — quadratic part of kappa.  Square in f32 (v5e VPU has no bf16),
    # feed the MXU in bf16, accumulate in f32.
    x_f32 = x.astype(jnp.float32)
    x_sq = (x_f32 * x_f32).astype(jnp.bfloat16)
    acc = acc + jnp.dot(x_sq, w2_ref[...], preferred_element_type=jnp.float32)

    o_ref[...] = acc.astype(o_ref.dtype)


def rpn_forward(x, psi_w, pi_w):
    """Single-layer RPN forward pass via pallas_call, tiled over (batch, n)."""
    b, m = x.shape
    n, D = psi_w.shape
    assert D == 2 * m, "psi(w) must map to the expansion dimension D = 2*m"
    assert pi_w.shape == (n, m)

    # ---- one-time algebraic fold (outside the kernel), bf16 operands ----
    #   out = x @ (psi[:, :m] + pi)^T + (x*x) @ psi[:, m:]^T
    w1 = (psi_w[:, :m] + pi_w).T.astype(jnp.bfloat16)                # (m, n)
    w2 = psi_w[:, m:].T.astype(jnp.bfloat16)                         # (m, n)
    x_bf = x.astype(jnp.bfloat16)

    # ---- output (n) tiling: only pad/tile when n is large enough to pay off;
    #      tiny n keeps a full-extent output block (masked store, no padded work).
    if n >= 512:
        tile_n = 256                                                 # v6e MXU-friendly
        n_pad = _round_up(n, tile_n)
    else:
        tile_n = n
        n_pad = n
    n_tiles = n_pad // tile_n

    # ---- batch tiling: cap tiles at ~512 rows, keep >= 2 tiles when b allows
    #      (v7x has 2 TensorCores), and minimize tail padding.
    b_splits = max(2, pl.cdiv(b, 512))
    tile_b = min(_round_up(pl.cdiv(b, b_splits), 8), _round_up(b, 8))
    b_pad = _round_up(b, tile_b)
    b_tiles = b_pad // tile_b

    # ---- minimal padding, only where actually needed (exact: padded rows/cols are 0)
    if b_pad != b:
        x_bf = jnp.pad(x_bf, ((0, b_pad - b), (0, 0)))
    if n_pad != n:
        w1 = jnp.pad(w1, ((0, 0), (0, n_pad - n)))
        w2 = jnp.pad(w2, ((0, 0), (0, n_pad - n)))

    # Weight blocks: when n is not tiled their index_map is constant across the
    # grid, so a single VMEM buffer suffices (halves resident-weight VMEM).
    w_kwargs = dict(pipeline_mode=pl.Buffered(1)) if n_tiles == 1 else {}

    in_specs = [
        pl.BlockSpec((tile_b, m), lambda i, j: (i, 0)),              # X batch tile
        pl.BlockSpec((m, tile_n), lambda i, j: (0, j), **w_kwargs),  # W1
        pl.BlockSpec((m, tile_n), lambda i, j: (0, j), **w_kwargs),  # W2
    ]
    out_spec = pl.BlockSpec((tile_b, tile_n), lambda i, j: (i, j))

    # ---- VMEM budget sized from the actual tile footprint (+ headroom),
    #      capped at v7x's 64 MiB physical VMEM so it is portable.
    w_bufs = 1 if n_tiles == 1 else 2
    vmem_need = (
        2 * tile_b * m * 2                       # x tile, bf16, double-buffered
        + w_bufs * 2 * (m * tile_n * 2)          # w1 + w2 tiles, bf16
        + 2 * tile_b * tile_n * 4                # out tile, f32, double-buffered
        + tile_b * tile_n * 4                    # f32 accumulator
        + 2 * tile_b * m * 4                     # x_f32 / x_sq temporaries
    )
    vmem_limit = int(min(64 << 20, max(8 << 20, 2 * vmem_need)))

    # Advisory cost hint so XLA can overlap the (tiny) wrapper-side weight fold.
    flops = 4 * b_pad * m * n_pad + 2 * b_pad * m
    bytes_accessed = b_pad * m * 2 + 2 * (m * n_pad * 2) + b_pad * n_pad * 4

    out_p = pl.pallas_call(
        rpn_kernel,
        out_shape=jax.ShapeDtypeStruct((b_pad, n_pad), jnp.float32),
        grid_spec=pltpu.PrefetchScalarGridSpec(
            num_scalar_prefetch=0,
            grid=(b_tiles, n_tiles),
            in_specs=in_specs,
            out_specs=out_spec,
        ),
        compiler_params=pltpu.CompilerParams(
            dimension_semantics=("parallel", "parallel"),
            vmem_limit_bytes=vmem_limit,
        ),
        cost_estimate=pl.CostEstimate(
            flops=flops, transcendentals=0, bytes_accessed=bytes_accessed),
    )(x_bf, w1, w2)

    # slice any batch / n padding back off
    return out_p[:b, :n]
    # TODO(synk): if m grows large, add a K grid axis with a pl.when-guarded f32
    # accumulator so the weight slabs stream instead of being tile-resident.


def rpn_reference(x, psi_w, pi_w):
    """Pure-JAX f32 reference for correctness checking (unfused formulation)."""
    kappa = jnp.concatenate([x, x * x], axis=-1)
    return kappa @ psi_w.T + x @ pi_w.T


if __name__ == "__main__":
    # Small, deterministic shapes: batch=16, m=32 (input dim), n=16 (output dim), D=2*m=64.
    b, m, n = 16, 32, 16
    D = 2 * m

    key = jax.random.PRNGKey(0)
    k_x, k_psi, k_pi = jax.random.split(key, 3)

    x = jax.random.normal(k_x, (b, m), dtype=jnp.float32)
    # psi(w): raw parameter vector w of length n*D, reconciled (reshaped) to (n, D).
    w_raw = jax.random.normal(k_psi, (n * D,), dtype=jnp.float32) * 0.05
    psi_w = w_raw.reshape(n, D)
    # pi remainder weights (linear remainder), torch.nn.Linear-style (out, in).
    pi_w = jax.random.normal(k_pi, (n, m), dtype=jnp.float32) * 0.05

    out = jax.block_until_ready(rpn_forward(x, psi_w, pi_w))
    ref = rpn_reference(x, psi_w, pi_w)

    assert out.shape == (b, n)
    # bf16 operands with f32 accumulation vs. pure-f32 reference: use a
    # bf16-appropriate tolerance.
    assert jnp.allclose(out, ref, atol=2e-2, rtol=2e-2), "Pallas kernel mismatch vs reference"

    # TODO(synk): save_ckpt / load_ckpt / to_config are file-I/O & config plumbing with no kernel equivalent.
    print("KERNEL_OK")
</pallas_src>

<mosaic_0001>
module attributes {stable_mosaic.version = 11 : i64} {
  func.func @rpn_kernel(%arg0: i32, %arg1: i32, %arg2: memref<8x32xbf16, #tpu.memory_space<vmem>>, %arg3: memref<32x16xbf16, #tpu.memory_space<vmem>>, %arg4: memref<32x16xbf16, #tpu.memory_space<vmem>>, %arg5: memref<8x16xf32, #tpu.memory_space<vmem>>) attributes {dimension_semantics = [#tpu.dimension_semantics<parallel>, #tpu.dimension_semantics<parallel>], iteration_bounds = array<i64: 2, 1>, scalar_prefetch = 0 : i64, scratch_operands = 0 : i64, tpu.core_type = #tpu.core_type<tc>, window_params = [{transform_indices = @transform_0, window_bounds = array<i64: 8, 32>}, {pipeline_mode = #tpu.pipeline_mode<synchronous>, transform_indices = @transform_1, window_bounds = array<i64: 32, 16>}, {pipeline_mode = #tpu.pipeline_mode<synchronous>, transform_indices = @transform_2, window_bounds = array<i64: 32, 16>}, {transform_indices = @transform_3, window_bounds = array<i64: 8, 16>}]} {
    %c0 = arith.constant 0 : index
    %c0_0 = arith.constant 0 : index
    %0 = vector.load %arg2[%c0, %c0_0] : memref<8x32xbf16, #tpu.memory_space<vmem>>, vector<8x32xbf16>
    %c0_1 = arith.constant 0 : index
    %c0_2 = arith.constant 0 : index
    %1 = vector.load %arg3[%c0_1, %c0_2] : memref<32x16xbf16, #tpu.memory_space<vmem>>, vector<32x16xbf16>
    %cst = arith.constant dense<0.000000e+00> : vector<8x16xf32>
    %2 = tpu.matmul %0, %1, %cst {dimension_numbers = #tpu.dot_dimension_numbers<[1], [0], [0], [1], [0, 0, 1, 1], [], []>} : vector<8x32xbf16>, vector<32x16xbf16>, vector<8x16xf32> -> vector<8x16xf32>
    %3 = arith.extf %0 : vector<8x32xbf16> to vector<8x32xf32>
    %4 = arith.mulf %3, %3 : vector<8x32xf32>
    %5 = arith.truncf %4 : vector<8x32xf32> to vector<8x32xbf16>
    %c0_3 = arith.constant 0 : index
    %c0_4 = arith.constant 0 : index
    %6 = vector.load %arg4[%c0_3, %c0_4] : memref<32x16xbf16, #tpu.memory_space<vmem>>, vector<32x16xbf16>
    %cst_5 = arith.constant dense<0.000000e+00> : vector<8x16xf32>
    %7 = tpu.matmul %5, %6, %cst_5 {dimension_numbers = #tpu.dot_dimension_numbers<[1], [0], [0], [1], [0, 0, 1, 1], [], []>} : vector<8x32xbf16>, vector<32x16xbf16>, vector<8x16xf32> -> vector<8x16xf32>
    %8 = arith.addf %2, %7 : vector<8x16xf32>
    %c0_6 = arith.constant 0 : index
    %c0_7 = arith.constant 0 : index
    %9 = vector.load %arg5[%c0_6, %c0_7] : memref<8x16xf32, #tpu.memory_space<vmem>>, vector<8x16xf32>
    tpu.vector_store %arg5[%c0_6, %c0_7], %8 {strides = array<i32>} : memref<8x16xf32, #tpu.memory_space<vmem>>, vector<8x16xf32>,
    return
  }
  func.func @transform_0(%arg0: i32, %arg1: i32) -> (i32, i32) {
    %c0_i32 = arith.constant 0 : i32
    %c0_i32_0 = arith.constant 0 : i32
    return %arg0, %c0_i32 : i32, i32
  }
  func.func @transform_1(%arg0: i32, %arg1: i32) -> (i32, i32) {
    %c0_i32 = arith.constant 0 : i32
    %c0_i32_0 = arith.constant 0 : i32
    return %c0_i32, %arg1 : i32, i32
  }
  func.func @transform_2(%arg0: i32, %arg1: i32) -> (i32, i32) {
    %c0_i32 = arith.constant 0 : i32
    %c0_i32_0 = arith.constant 0 : i32
    return %c0_i32, %arg1 : i32, i32
  }
  func.func @transform_3(%arg0: i32, %arg1: i32) -> (i32, i32) {
    %c0_i32 = arith.constant 0 : i32
    return %arg0, %arg1 : i32, i32
  }
}

</mosaic_0001>

<bundles_post_ra>
// kernel: tpu_custom_call.1
= control target key start
LH: loop header
LB: loop body
LE: loop exit
PB: predicated region body
PF: predicated region fallthrough
CT: control target
= control target key end

     0   :  { %8 = vsyncpa [#allocation3], 0  ;;  %s783_s0 = inlined_call_operand.vmem [shape: bf16[16,32], index: 0, kind: input, shape index: {}]   ;;  %s784_s1 = inlined_call_operand.vmem [shape: bf16[32,16], index: 1, kind: input, shape index: {}]   ;;  %s785_s2 = inlined_call_operand.vmem [shape: bf16[32,16], index: 2, kind: input, shape index: {}]   ;;  %s786_s3 = inlined_call_operand.hbm [shape: f32[16,16], index: 3, kind: output, shape index: {}]  }
   0x1   :  { %10 = vsyncpa [#allocation3 + $0x1], 0  ;;  %s659_s12 = smov 0   ;;  %s661_s13 = smov 0  }
   0x2   :  { %s663_s14 = smov 0   ;;  %s665_s15 = smov 0  }
   0x3   :  { %s667_s16 = smov 0   ;;  %s669_s17 = smov 0  }
   0x4 LB: > { %s453_s18 = sadd.s32 4294967295, %s634_s17   ;;  %s454_s19 = sadd.s32 4294967294, %s634_s17   ;;  %s634_s17 = sphi %s669_s17, %s16_s17   ;;  %s630_s16 = sphi %s667_s16, %s793_s16   ;;  %s626_s15 = sphi %s665_s15, %s792_s15   ;;  %s622_s14 = sphi %s663_s14, %s791_s14   ;;  %s618_s13 = sphi %s661_s13, %s790_s13   ;;  %s614_s12 = sphi %s659_s12, %s789_s12  }
   0x5   : > { %s28_s20 = sadd.s32 1, %s630_s16  ;;  %s115_s21 = sadd.s32 1, %s622_s14 }
   0x6   : > { %p30_p0 = scmp.ge.s32.totalorder %s28_s20, 2  ;;  %p125_p1 = scmp.ne.s32.totalorder %s622_s14, %s618_s13 }
   0x7   : > { %p126_p2 = scmp.eq.s32.totalorder %s453_s18, 1  ;;  %p131_p3 = scmp.ne.s32.totalorder %s618_s13, %s614_s12 }
   0x8   : > { %s795_s20 = smov (%p30_p0, %s28_s20), 0  ;;  %p132_p5 = scmp.eq.s32.totalorder %s454_s19, 1 }
   0x9   : > { %p699_p4 = por %p126_p2, %p125_p1  ;;  %s110_s23 = ssub.s32 %s630_s16, %s795_s20 }
   0xa   : > { %p459_p6 = scmp.ge.s32.totalorder %s634_s17, 1  ;;  %p113_p7 = scmp.eq.s32.totalorder %s110_s23, 0 }
   0xb   : > { %p706_p8 = por %p132_p5, %p131_p3  ;;  %p171_p9 = scmp.lt.s32.totalorder %s634_s17, 3 }
   0xc   : > { %s712_s25 = scalar_select %p113_p7, %s622_s14, %s115_s21  }
   0xd   : > { %p172_p10 = pnand %p459_p6, %p171_p9 }
   0xe   : > { %v552_v0 = vld [vmem:[%s784_s1] sm:$0xff] (!%p172_p10)   ;;  %v636_v1 = vmov (!%p172_p10), 0.0   ;;  %v554_v3 = vld [vmem:[%s784_s1 + $0x8] sm:$0xff] (!%p172_p10)   ;;  %vm637_vm0 = vmmov (!%p172_p10), 0   ;;  %p202_p11 = scmp.lt.s32.totalorder (!%p172_p10), %s626_s15, 1  ;;  %vm239_vm1 = vcmask (!%p172_p10), 261120  }
   0xf   : > { %175 = sbr.rel (%p172_p10) target bundleno = 261 (0x105), region = 32  ;;  %486 = vmatprep.subr.bf16.mxu0 (!%p172_p10), %v636_v1  ;;  %478 = vmatprep.subr.bf16.mxu1 (!%p172_p10), %v636_v1  ;;  %v553_v2 = vld [vmem:[%s785_s2] sm:$0xff] (!%p172_p10)   ;;  %v555_v4 = vld [vmem:[%s785_s2 + $0x8] sm:$0xff] (!%p172_p10)   ;;  %s199_s18 = sand.u32 (!%p172_p10), 1, %s618_s13   ;;  %vm338_vm2 = vcmask (!%p172_p10), 130048  }
  0x10   : > { %487 = vmatpush3.bf16.msra.mxu0 (!%p172_p10), %v552_v0  ;;  %490 = vmatprep.mubr.msk.bf16.mxu0 (!%p172_p10), %vm637_vm0, %v636_v1  ;;  %s460_s19 = sshll.u32 (!%p172_p10), %s199_s18, 3  ;;  %s469_s21 = sshll.u32 (!%p172_p10), %s626_s15, 7 }
  0x11   : > { %479 = vmatpush3.bf16.msra.mxu1 (!%p172_p10), %v553_v2  ;;  %488 = vmatprep.subr.bf16.mxu0 (!%p172_p10), %v636_v1  ;;  %s201_s23 = scalar_lea.vmem (!%p172_p10), [#allocation2], %s460_s19  ;;  %s736_s29 = scalar_lea.hbm (!%p172_p10), %s786_s3, %s469_s21 }
  0x12   : > { %480 = vmatprep.subr.bf16.mxu1 (!%p172_p10), %v636_v1  ;;  %482 = vmatprep.mubr.msk.bf16.mxu1 (!%p172_p10), %vm637_vm0, %v636_v1  ;;  %s355_s26 = sshll.u32 (!%p172_p10), %s201_s23, 4  ;;  %s638_s4 = smov (!%p172_p10), [#allocation2]   ;;  %s738_s26 = int_to_ptr.vmem [resolvable:$true] %s355_s26 }
  0x13   : > { %s556_s30 = scalar_lea.vmem (!%p172_p10), %s738_s26, 128  ;;  %s560_s5 = sshll.u32 (!%p172_p10), %s638_s4, 4  ;;  %s561_s5 = int_to_ptr.vmem [resolvable:$false] %s560_s5 }
  0x14   : > { %489 = vmatpush3.bf16.msra.mxu0 (!%p172_p10), %v554_v3  ;;  %p557_p12 = scmp.ne.s32.totalorder (!%p172_p10), %s738_s26, %s556_s30  ;;  %s562_s6 = scalar_lea.vmem (!%p172_p10), %s561_s5, 256 }
  0x15   : > { %481 = vmatpush3.bf16.msra.mxu1 (!%p172_p10), %v555_v4  ;;  %p563_p1 = scmp.lt.s32.totalorder (!%p172_p10), %s738_s26, %s561_s5  ;;  %p564_p2 = scmp.lt.s32.totalorder (!%p172_p10), %s562_s6, %s556_s30 }
  0x16   : > { %s203_s7 = scalar_select %p202_p11, %s626_s15, 1 }
  0x17   : > { %s341_s15 = scalar_lea.sflag [#allocation3], %s199_s18  ;;  %p558_p13 = pnand %p557_p12, %p699_p4 }
  0x18   : > { %s461_s8 = sshll.u32 %s203_s7, 2  ;;  %p565_p3 = por %p564_p2, %p563_p1 }
  0x19   : > { %s205_s11 = scalar_lea.vmem %s783_s0, %s461_s8  ;;  %p559_p0 = pneg %p558_p13 }
  0x1a   : > { %v215_v5 = vld [vmem:[%s205_s11] sm:$0xf] }
  0x1b   : > { %v220_v6 = vunpack.c.l.bf16 %v215_v5  ;;  %491 = vmatmul.mubr.msk.bf16.vlgmr.msra.gmra.mrb[0].mxu0 %vm239_vm1, %v215_v5  ;;  %p566_p5 = pnand %p565_p3, %p559_p0 }
  0x1d   : > { %v221_v7 = vmul.f32 %v220_v6, %v220_v6 }
  0x1f   : > { %v222_v8 = vpack.c.bf16 %v221_v7, %v221_v7 }
  0x21   : > { %483 = vmatmul.mubr.msk.bf16.vlgmr.msra.gmra.mrb[0].mxu1 %vm239_vm1, %v222_v8 }
  0xee   : > { %v332_v9 = vpop.f32.mrb[0].mxu0 }
  0xef   : > { %v492_v10 = vpop.f32.mrb[1].mxu0 }
  0xf0   : > { %v335_v11 = vpop.f32.mrb[2].mxu0 }
  0xf1   : > { %v493_v12 = vpop.f32.mrb[3].mxu0 }
  0xf4   : > { %v277_v13 = vpop.f32.mrb[0].mxu1 }
  0xf5   : > { %v333_v14 = vadd.f32 %v332_v9, %v277_v13  ;;  %v484_v15 = vpop.f32.mrb[1].mxu1 }
  0xf6   : > { %v280_v16 = vpop.f32.mrb[2].mxu1 }
  0xf7   : > { %v485_v17 = vpop.f32.mrb[3].mxu1  ;;  %339 = vst.msk [vmem:[%s201_s23] sm:$0xff] %vm338_vm2, %v333_v14 }
  0xf8   : > { %569 = shalt.err (!%p566_p5)
}
  0xf9   : > { %s570_s7 = scalar_lea.hbm %s736_s29, 128  ;;  %s574_s10 = scalar_lea.hbm %s786_s3, 256 }
  0xfa   : > { %p571_p6 = scmp.ne.s32.totalorder %s736_s29, %s570_s7  ;;  %p575_p10 = scmp.lt.u32.totalorder %s736_s29, %s786_s3 }
  0xfb   : > { %p576_p11 = scmp.lt.u32.totalorder %s574_s10, %s570_s7  ;;  %p578_p13 = scmp.lt.u32.totalorder %s570_s7, %s736_s29 }
  0xfc   : > { %p572_p7 = pnand %p571_p6, %p699_p4 }
  0xfd   : > { %p577_p12 = por %p576_p11, %p575_p10 }
  0xfe   : > { %p573_p9 = pneg %p572_p7 }
  0xff   : > { %p579_p0 = por %p578_p13, %p577_p12 }
 0x101   : > { %p580_p1 = pnand %p579_p0, %p573_p9 }
 0x103   : > { %583 = shalt.err (!%p580_p1)
}
 0x104   : > { %495 = dma.vmem_to_hbm [thread:$0]  (%p699_p4), %s738_s26, 128, %s736_s29, %s341_s15  }
 0x105 PF: > { %p501_p2 = scmp.ge.s32.totalorder %s634_s17, 2  ;;  %s367_s19 = sand.u32 1, %s614_s12  }
 0x106   : > { %s368_s21 = scalar_lea.sflag [#allocation3], %s367_s19 }
 0x107   : > { %p498_p3 = pnand %p501_p2, %p706_p8 }
 0x109   : > { %609 = dma.done.wait (!%p498_p3), %s368_s21, 128  }
 0x10a   : > { %611 = vsyncadd (!%p498_p3), %s368_s21, 4294967168  ;;  %s16_s17 = sadd.s32 1, %s634_s17   ;;  %s789_s12 = smov %s618_s13 }
 0x10b   : > { %p13_p5 = scmp.ge.s32.totalorder %s16_s17, 4   ;;  %s790_s13 = smov %s622_s14 }
 0x10c   : > { %s791_s14 = smov %s712_s25  ;;  %s792_s15 = smov %s630_s16 }
 0x10d   : > { %s793_s16 = smov %s795_s20  ;;  %15 = sbr.rel (!%p13_p5) target bundleno = 4 (0x4), region = 73 }
 0x114   :  { %373 = vsyncpa [#allocation3], 1 }
 0x115   :  { %375 = vsyncpa [#allocation3 + $0x1], 1 }

</bundles_post_ra>
